<compile_context>
chip_gen: v7x
topology: tpu7x:2x2x1
jax: 0.10.0
libtpu: 0.0.40
codegen_flags: <defaults>
</compile_context>

<pallas_src>
import functools

import jax
import jax.numpy as jnp
from jax.experimental import pallas as pl
from jax.experimental.pallas import tpu as pltpu

_LANE = 128


def _round_up(x, m):
    return ((x + m - 1) // m) * m


def _round_down_min(x, m):
    return max(m, (x // m) * m)


def _vmem_capacity_bytes():
    try:
        return int(pltpu.get_tpu_info().vmem_capacity_bytes)
    except Exception:
        return 64 << 20  # conservative: assume the smallest per-core VMEM (v7x)


# --------------------------------------------------------------------------
# kernel helpers (traced inside the kernel body)
# --------------------------------------------------------------------------
def _clamp_pow(x, scal_ref, eps, p_static, compute_dtype):
    """clamp(min=eps) then x**p, in `compute_dtype` (bf16 for bf16 inputs)."""
    x = x.astype(compute_dtype)
    x = jnp.maximum(x, jnp.asarray(eps, dtype=compute_dtype))
    if p_static is not None:
        return x ** int(p_static)                 # lax.integer_pow -> pure VPU
    p = scal_ref[0].astype(compute_dtype)
    return jnp.exp(p * jnp.log(x))                # x > 0 after clamp (EUP path)


def _root(m, scal_ref, p_static):
    """m ** (1/p) for strictly positive f32 m."""
    if p_static is not None:
        if int(p_static) == 1:
            return m
        if int(p_static) == 2:
            return jnp.sqrt(m)
        return jnp.exp(jnp.float32(1.0 / float(p_static)) * jnp.log(m))
    return jnp.exp(scal_ref[1] * jnp.log(m))      # 1/p precomputed on the host


# --------------------------------------------------------------------------
# kernels
# --------------------------------------------------------------------------
def _gem_single_kernel(scal_ref, x_ref, o_ref, *, eps, inv_hw, p_static,
                       compute_dtype):
    # scal_ref : SMEM (2,) f32 = [p, 1/p]   (unused on the static-p path)
    # x_ref    : VMEM (Bt, Ct, HW) input block (full spatial extent)
    # o_ref    : VMEM (Bt, Ct, 1)  output block
    xp = _clamp_pow(x_ref[...], scal_ref, eps, p_static, compute_dtype)
    s = jnp.sum(xp.astype(jnp.float32), axis=2, keepdims=True)   # f32 accumulate
    m = s * jnp.float32(inv_hw)
    o_ref[...] = _root(m, scal_ref, p_static).astype(o_ref.dtype)


def _gem_tiled_kernel(scal_ref, x_ref, o_ref, acc_ref, *, eps, hw, thw,
                      inv_hw, p_static, compute_dtype):
    # x_ref   : VMEM (Bt, Ct, Thw) spatial tile (Thw % 128 == 0)
    # o_ref   : VMEM (Bt, Ct, 1)   output block, resident across the HW axis
    # acc_ref : VMEM (Bt, Ct, 128) f32 lane-partial accumulator
    k = pl.program_id(2)
    nk = pl.num_programs(2)

    @pl.when(k == 0)
    def _init():
        acc_ref[...] = jnp.zeros_like(acc_ref)

    xp = _clamp_pow(x_ref[...], scal_ref, eps, p_static, compute_dtype)
    n_chunks = thw // _LANE

    def _accumulate(vals):
        # tile-aligned 128-wide lane chunks -> no relayout, no per-step XLU reduce
        acc = acc_ref[...]
        for j in range(n_chunks):
            acc = acc + vals[:, :, j * _LANE:(j + 1) * _LANE].astype(jnp.float32)
        acc_ref[...] = acc

    if hw % thw != 0:
        # Ragged spatial tail: mask only on the final reduction step.
        @pl.when(k < nk - 1)
        def _steady():
            _accumulate(xp)

        @pl.when(k == nk - 1)
        def _tail():
            lane = jax.lax.broadcasted_iota(jnp.int32, xp.shape, dimension=2)
            valid = (k * thw + lane) < hw
            _accumulate(jnp.where(valid, xp, jnp.zeros_like(xp)))
    else:
        _accumulate(xp)

    @pl.when(k == nk - 1)
    def _finalize():
        # Single cross-lane reduce + root, once per (B, C) block.
        # NOTE: rows of a partial C block (C % Ct != 0) may hold garbage from
        # the padded VMEM buffer; they are never written back to HBM.
        s = jnp.sum(acc_ref[...], axis=2, keepdims=True)
        m = s * jnp.float32(inv_hw)
        o_ref[...] = _root(m, scal_ref, p_static).astype(o_ref.dtype)


# --------------------------------------------------------------------------
# tiling heuristics
# --------------------------------------------------------------------------
def _choose_tiles(B, C, HW, itemsize, block_budget):
    """Pick (Bt, Ct, Thw, tiled_hw).  Ct is a multiple of 8/16 or == C; Thw is
    a multiple of 128 (tiled case) or the full spatial extent."""
    sub = 16 if itemsize == 2 else 8
    row_bytes = HW * itemsize

    def c_align(c):
        if c >= C:
            return C
        a = sub if c >= sub else 8
        c = (c // a) * a
        return c if c > 0 else C

    if HW < _LANE or sub * row_bytes <= block_budget:
        # Full spatial extent per block: no reduction grid axis, no masking.
        thw = HW
        ct = c_align(block_budget // max(row_bytes, 1))
        bt = 1
        if ct == C:
            bt = max(1, min(B, block_budget // max(C * row_bytes, 1)))
        return bt, ct, thw, False
    # Very large feature maps: tile the spatial (lane) axis and accumulate.
    min_ct = C if C <= sub else sub
    thw_cap = min(_round_up(HW, _LANE), 128 * _LANE)  # bound the chunk unroll
    thw = min(thw_cap,
              _round_down_min(block_budget // max(min_ct * itemsize, 1), _LANE))
    ct = c_align(min(block_budget // max(thw * itemsize, 1), C))
    return 1, ct, thw, True


def _ensure_parallel_tiles(B, C, Bt, Ct, itemsize, min_tiles=2):
    """Expose >= min_tiles (B, C) grid tiles so both v7x TensorCores get work."""
    sub = 16 if itemsize == 2 else 8
    while pl.cdiv(B, Bt) * pl.cdiv(C, Ct) < min_tiles:
        if Bt > 1:
            Bt = (Bt + 1) // 2
        elif Ct >= 2 * sub:
            Ct = max(sub, ((Ct // 2) // sub) * sub)
        else:
            break
    return Bt, Ct


# --------------------------------------------------------------------------
# wrapper
# --------------------------------------------------------------------------
def gem_pallas(x, p, eps=1e-6, p_static=None, *, block_budget_bytes=None):
    """GeM pooling.  x: (B, C, H, W); p: (1,) float array.

    If `p_static` is given (module default p=3, requires_grad=False) the kernel
    uses the integer-power VPU fast path; otherwise p / 1/p are read from SMEM.
    """
    B, C, H, W = x.shape
    HW = H * W
    x_l = x.reshape(B, C, HW)                      # free reshape, NCHW kept
    itemsize = jnp.dtype(x.dtype).itemsize

    vmem_cap = _vmem_capacity_bytes()
    if block_budget_bytes is None:
        # One input block; double buffering + compiler temps of the elementwise
        # chain must stay well inside VMEM on every generation (v7x: 64 MiB).
        block_budget_bytes = max(1 << 20, min(8 << 20, vmem_cap // 10))

    Bt, Ct, Thw, tiled_hw = _choose_tiles(B, C, HW, itemsize, block_budget_bytes)
    Bt, Ct = _ensure_parallel_tiles(B, C, Bt, Ct, itemsize)

    # bf16 inputs: clamp / x^p in bf16 (native VALU on v6e/v7x, upcast on v5e);
    # all accumulation stays f32.
    compute_dtype = jnp.bfloat16 if x.dtype == jnp.bfloat16 else jnp.float32

    p_val = jnp.asarray(p, dtype=jnp.float32).reshape(-1)[0]
    scal = jnp.stack([p_val, 1.0 / p_val]).astype(jnp.float32)   # [p, 1/p] SMEM

    block_bytes = Bt * Ct * Thw * itemsize
    vmem_limit = int(min(vmem_cap - (vmem_cap // 4),
                         max(32 << 20, 6 * block_bytes + (8 << 20))))

    if tiled_hw:
        grid = (pl.cdiv(B, Bt), pl.cdiv(C, Ct), pl.cdiv(HW, Thw))
        kernel = functools.partial(
            _gem_tiled_kernel, eps=float(eps), hw=HW, thw=Thw, inv_hw=1.0 / HW,
            p_static=p_static, compute_dtype=compute_dtype)
        in_specs = [
            pl.BlockSpec(memory_space=pltpu.SMEM),                   # [p, 1/p]
            pl.BlockSpec((Bt, Ct, Thw), lambda b, c, k: (b, c, k)),
        ]
        out_specs = pl.BlockSpec((Bt, Ct, 1), lambda b, c, k: (b, c, 0))
        scratch_shapes = [pltpu.VMEM((Bt, Ct, _LANE), jnp.float32)]
        dim_sem = ("parallel", "parallel", "arbitrary")
    else:
        grid = (pl.cdiv(B, Bt), pl.cdiv(C, Ct))
        kernel = functools.partial(
            _gem_single_kernel, eps=float(eps), inv_hw=1.0 / HW,
            p_static=p_static, compute_dtype=compute_dtype)
        in_specs = [
            pl.BlockSpec(memory_space=pltpu.SMEM),                   # [p, 1/p]
            pl.BlockSpec((Bt, Ct, HW), lambda b, c: (b, c, 0)),
        ]
        out_specs = pl.BlockSpec((Bt, Ct, 1), lambda b, c: (b, c, 0))
        scratch_shapes = []
        dim_sem = ("parallel", "parallel")

    out = pl.pallas_call(
        kernel,
        out_shape=jax.ShapeDtypeStruct((B, C, 1), x.dtype),
        grid=grid,
        in_specs=in_specs,
        out_specs=out_specs,
        scratch_shapes=scratch_shapes,
        compiler_params=pltpu.CompilerParams(
            dimension_semantics=dim_sem,
            vmem_limit_bytes=vmem_limit,
        ),
    )(scal, x_l)

    return out.reshape(B, C, 1, 1)                 # match PyTorch (B, C, 1, 1)


def gem_reference(x, p, eps=1e-6):
    pv = jnp.asarray(p, jnp.float32).reshape(-1)[0]
    xf = jnp.maximum(x.astype(jnp.float32), eps)
    m = jnp.mean(xf ** pv, axis=(2, 3), keepdims=True)
    return (m ** (1.0 / pv)).astype(x.dtype)


if __name__ == "__main__":
    k0, k1 = jax.random.split(jax.random.PRNGKey(0))
    eps = 1e-6
    p = jnp.ones((1,), dtype=jnp.float32) * 3.0   # GeM default: p=3, frozen

    # --- canonical small NCHW input ---------------------------------------
    B, C, H, W = 2, 4, 16, 16
    x = jax.random.normal(k0, (B, C, H, W), dtype=jnp.float32)
    y_ref = gem_reference(x, p, eps)

    # Static-p fast path (integer_pow, pure VPU).
    y = gem_pallas(x, p, eps, p_static=3)
    jax.block_until_ready(y)
    assert y.shape == (B, C, 1, 1), y.shape
    assert jnp.allclose(y, y_ref, rtol=1e-4, atol=1e-5), (
        float(jnp.max(jnp.abs(y - y_ref))))

    # Dynamic-p path (p and 1/p read from SMEM at runtime).
    y_dyn = gem_pallas(x, p, eps, p_static=None)
    jax.block_until_ready(y_dyn)
    assert jnp.allclose(y_dyn, y_ref, rtol=1e-4, atol=1e-5), (
        float(jnp.max(jnp.abs(y_dyn - y_ref))))

    # Non-128-multiple spatial extent (20x20), default single-pass path.
    x2 = jax.random.normal(k1, (1, 8, 20, 20), dtype=jnp.float32)
    y2_ref = gem_reference(x2, p, eps)
    y2 = gem_pallas(x2, p, eps, p_static=3)
    jax.block_until_ready(y2)
    assert jnp.allclose(y2, y2_ref, rtol=1e-4, atol=1e-5), (
        float(jnp.max(jnp.abs(y2 - y2_ref))))

    # Same input forced down the tiled/accumulated path (ragged tail mask).
    y3 = gem_pallas(x2, p, eps, p_static=3, block_budget_bytes=8 * 1024)
    jax.block_until_ready(y3)
    assert jnp.allclose(y3, y2_ref, rtol=1e-4, atol=1e-5), (
        float(jnp.max(jnp.abs(y3 - y2_ref))))

    # bf16 inputs: clamp/cube in bf16, f32 accumulation (loose tolerance).
    xb = x.astype(jnp.bfloat16)
    yb_ref = gem_reference(xb, p, eps)
    yb = gem_pallas(xb, p, eps, p_static=3)
    jax.block_until_ready(yb)
    assert jnp.allclose(yb.astype(jnp.float32), yb_ref.astype(jnp.float32),
                        rtol=5e-2, atol=2e-2), (
        float(jnp.max(jnp.abs(yb.astype(jnp.float32) -
                              yb_ref.astype(jnp.float32)))))

    print("KERNEL_OK")
</pallas_src>

<mosaic_0001>
module attributes {stable_mosaic.version = 11 : i64} {
  func.func @_gem_single_kernel(%arg0: i32, %arg1: i32, %arg2: memref<2xf32, #tpu.memory_space<smem>>, %arg3: memref<1x4x256xf32, #tpu.memory_space<vmem>>, %arg4: memref<1x4x1xf32, #tpu.memory_space<vmem>>) attributes {dimension_semantics = [#tpu.dimension_semantics<parallel>, #tpu.dimension_semantics<parallel>], iteration_bounds = array<i64: 2, 1>, scalar_prefetch = 0 : i64, scratch_operands = 0 : i64, tpu.core_type = #tpu.core_type<tc>, window_params = [{transform_indices = @transform_0, window_bounds = array<i64: 2>}, {transform_indices = @transform_1, window_bounds = array<i64: 1, 4, 256>}, {transform_indices = @transform_2, window_bounds = array<i64: 1, 4, 1>}]} {
    %c0 = arith.constant 0 : index
    %c0_0 = arith.constant 0 : index
    %c0_1 = arith.constant 0 : index
    %0 = vector.load %arg3[%c0, %c0_0, %c0_1] : memref<1x4x256xf32, #tpu.memory_space<vmem>>, vector<1x4x256xf32>
    %cst = arith.constant 9.99999997E-7 : f32
    %1 = vector.broadcast %cst : f32 to vector<1x4x256xf32>
    %2 = arith.maximumf %0, %1 : vector<1x4x256xf32>
    %3 = arith.mulf %2, %2 : vector<1x4x256xf32>
    %4 = arith.mulf %2, %3 : vector<1x4x256xf32>
    %cst_2 = arith.constant dense<0.000000e+00> : vector<1x4xf32>
    %5 = vector.multi_reduction <add>, %4, %cst_2 [2] : vector<1x4x256xf32> to vector<1x4xf32>
    %6 = vector.shape_cast %5 : vector<1x4xf32> to vector<1x4x1xf32>
    %cst_3 = arith.constant 3.906250e-03 : f32
    %7 = vector.broadcast %cst_3 : f32 to vector<1x4x1xf32>
    %8 = arith.mulf %6, %7 : vector<1x4x1xf32>
    %9 = math.log %8 : vector<1x4x1xf32>
    %cst_4 = arith.constant 0.333333343 : f32
    %10 = vector.broadcast %cst_4 : f32 to vector<1x4x1xf32>
    %11 = arith.mulf %10, %9 : vector<1x4x1xf32>
    %12 = math.exp %11 : vector<1x4x1xf32>
    %c0_5 = arith.constant 0 : index
    %c0_6 = arith.constant 0 : index
    %c0_7 = arith.constant 0 : index
    %13 = vector.load %arg4[%c0_5, %c0_6, %c0_7] : memref<1x4x1xf32, #tpu.memory_space<vmem>>, vector<1x4x1xf32>
    tpu.vector_store %arg4[%c0_5, %c0_6, %c0_7], %12 {strides = array<i32>} : memref<1x4x1xf32, #tpu.memory_space<vmem>>, vector<1x4x1xf32>,
    return
  }
  func.func @transform_0(%arg0: i32, %arg1: i32) -> i32 {
    %c0_i32 = arith.constant 0 : i32
    %c0_i32_0 = arith.constant 0 : i32
    return %c0_i32 : i32
  }
  func.func @transform_1(%arg0: i32, %arg1: i32) -> (i32, i32, i32) {
    %c0_i32 = arith.constant 0 : i32
    %c0_i32_0 = arith.constant 0 : i32
    return %arg0, %arg1, %c0_i32 : i32, i32, i32
  }
  func.func @transform_2(%arg0: i32, %arg1: i32) -> (i32, i32, i32) {
    %c0_i32 = arith.constant 0 : i32
    %c0_i32_0 = arith.constant 0 : i32
    return %arg0, %arg1, %c0_i32 : i32, i32, i32
  }
}

</mosaic_0001>

<bundles_post_ra>
// kernel: tpu_custom_call.1
= control target key start
LH: loop header
LB: loop body
LE: loop exit
PB: predicated region body
PF: predicated region fallthrough
CT: control target
= control target key end

     0   :  { %7 = vsyncpa [#allocation4], 0  ;;  %s680_s0 = inlined_call_operand.hbm [shape: f32[2], index: 0, kind: input, shape index: {}]   ;;  %s681_s1 = inlined_call_operand.hbm [shape: f32[2,4,256], index: 1, kind: input, shape index: {}]   ;;  %s682_s2 = inlined_call_operand.vmem [shape: f32[2,4,1], index: 2, kind: output, shape index: {}]  }
   0x1   :  { %8 = vsyncpa [#allocation3], 0 }
   0x2   :  { %10 = vsyncpa [#allocation3 + $0x1], 0  ;;  %s516_s9 = smov 0   ;;  %s518_s10 = smov 0  }
   0x3   :  { %s520_s11 = smov 0   ;;  %s522_s12 = smov 0  }
   0x4   :  { %s524_s13 = smov 0   ;;  %s526_s14 = smov 0  }
   0x5 LB: > { %s315_s15 = sadd.s32 4294967295, %s497_s14   ;;  %p71_p0 = scmp.ne.s32.totalorder %s481_s10, %s477_s9  ;;  %s497_s14 = sphi %s526_s14, %s16_s14   ;;  %s493_s13 = sphi %s524_s13, %s699_s13   ;;  %s489_s12 = sphi %s522_s12, %s698_s12   ;;  %s485_s11 = sphi %s520_s11, %s697_s11   ;;  %s481_s10 = sphi %s518_s10, %s696_s10   ;;  %s477_s9 = sphi %s516_s9, %s695_s9  }
   0x6   : > { %p546_p1 = scmp.eq.s32.totalorder %s315_s15, 0  ;;  %p317_p2 = scmp.ge.s32.totalorder %s497_s14, 1 }
   0x7   : > { %p110_p3 = scmp.lt.s32.totalorder %s497_s14, 3  ;;  %s28_s19 = sadd.s32 1, %s493_s13 }
   0x8   : > { %s686_s16 = scalar_select %p546_p1, 1, 0 }
   0x9   : > { %p554_p4 = por %p546_p1, %p71_p0  ;;  %p558_p5 = pnand %p317_p2, %p110_p3 }
   0xa   : > { %p571_p8 = scmp.ge.s32.totalorder %s28_s19, 2  ;;  %s58_s22 = sadd.s32 1, %s485_s11 }
   0xb   : > { %s687_s17 = scalar_select %p554_p4, 1, 0 }
   0xc   : > { %p336_p6 = pneg %p558_p5  ;;  %p65_p9 = scmp.ne.s32.totalorder %s485_s11, %s481_s10 }
   0xd   : > { %p66_p10 = scmp.eq.s32.totalorder %s497_s14, 0  ;;  %s400_s25 = scalar_lea.hbm %s680_s0, 16 }
   0xe   : > { %p567_p7 = pnand %p336_p6, %p546_p1  ;;  %p401_p11 = scmp.ne.s32.totalorder %s680_s0, %s400_s25 }
   0xf   : > { %p407_p2 = scmp.lt.u32.totalorder %s400_s25, %s680_s0 }
  0x10   : > { %p402_p12 = pneg %p567_p7 }
  0x12   : > { %p403_p13 = pnand %p402_p12, %p401_p11 }
  0x14   : > { %p404_p0 = pneg %p403_p13 }
  0x16   : > { %p409_p3 = pnand %p407_p2, %p404_p0 }
  0x18   : > { %412 = shalt.err (!%p409_p3)
}
  0x19   : > { %s499_s30 = smov [#allocation2]   ;;  %s701_s19 = smov (%p571_p8, %s28_s19), 0 }
  0x1a   : > { %339 = dma.hbm_to_smem (!%p567_p7), %s680_s0, 16, %s499_s30, [#allocation4]  }
  0x1b   : > { %p67_p6 = por %p66_p10, %p65_p9  ;;  %p345_p11 = scmp.lt.s32.totalorder %s497_s14, 2 }
  0x1c   : > { %s53_s5 = ssub.s32 %s493_s13, %s701_s19  ;;  %s132_s6 = sand.u32 1, %s485_s11  }
  0x1d   : > { %p56_p12 = scmp.eq.s32.totalorder %s53_s5, 0  ;;  %s320_s7 = sshll.u32 %s132_s6, 3 }
  0x1e   : > { %s329_s8 = sshll.u32 %s493_s13, 7  ;;  %s136_s21 = scalar_lea.vmem [#allocation5], %s320_s7 }
  0x1f   : > { %s608_s9 = scalar_select %p56_p12, %s485_s11, %s58_s22  }
  0x20   : > { %s613_s23 = scalar_lea.hbm %s681_s1, %s329_s8  ;;  %s146_s24 = sshll.u32 %s136_s21, 4  ;;  %s619_s24 = int_to_ptr.vmem [resolvable:$true] %s146_s24 }
  0x21   : > { %p615_p7 = pnand %p345_p11, %p67_p6  ;;  %s133_s22 = scalar_lea.sflag [#allocation3], %s132_s6 }
  0x22   : > { %s413_s26 = scalar_lea.hbm %s613_s23, 128  ;;  %s418_s29 = scalar_lea.hbm %s681_s1, 256 }
  0x23   : > { %p414_p8 = scmp.ne.s32.totalorder %s613_s23, %s413_s26  ;;  %p415_p9 = pneg %p615_p7 }
  0x24   : > { %p419_p0 = scmp.lt.u32.totalorder %s613_s23, %s681_s1  ;;  %p420_p2 = scmp.lt.u32.totalorder %s418_s29, %s413_s26 }
  0x25   : > { %p416_p10 = pnand %p415_p9, %p414_p8  ;;  %p422_p6 = scmp.lt.u32.totalorder %s413_s26, %s613_s23 }
  0x26   : > { %p421_p3 = por %p420_p2, %p419_p0 }
  0x27   : > { %p417_p13 = pneg %p416_p10 }
  0x28   : > { %p423_p11 = por %p422_p6, %p421_p3 }
  0x2a   : > { %p424_p12 = pnand %p423_p11, %p417_p13 }
  0x2c   : > { %427 = shalt.err (!%p424_p12)
}
  0x2d   : > { %s428_s4 = scalar_lea.vmem %s619_s24, 128  ;;  %s500_s5 = smov [#allocation5]  }
  0x2e   : > { %p429_p8 = scmp.ne.s32.totalorder %s619_s24, %s428_s4  ;;  %s433_s6 = sshll.u32 %s500_s5, 4  ;;  %s434_s6 = int_to_ptr.vmem [resolvable:$false] %s433_s6 }
  0x2f   : > { %s435_s7 = scalar_lea.vmem %s434_s6, 256  ;;  %p436_p1 = scmp.lt.s32.totalorder %s619_s24, %s434_s6 }
  0x30   : > { %p431_p10 = pnand %p429_p8, %p415_p9  ;;  %p437_p0 = scmp.lt.s32.totalorder %s435_s7, %s428_s4 }
  0x32   : > { %p432_p4 = pneg %p431_p10  ;;  %p438_p2 = por %p437_p0, %p436_p1 }
  0x34   : > { %p439_p3 = pnand %p438_p2, %p432_p4 }
  0x36   : > { %442 = shalt.err (!%p439_p3)
}
  0x37   : > { %343 = dma.hbm_to_vmem [thread:$0]  (!%p615_p7), %s613_s23, 128, %s619_s24, %s133_s22  }
  0x38   : > { %155 = sbr.rel (%p558_p5) target bundleno = 255 (0xff), region = 28  ;;  %p692_p9 = scmp.ne.s32.totalorder (!%p558_p5), %s686_s16, 0 }
  0x3f   : > { %468 = dma.done.wait (%p692_p9), [#allocation4], 16  }
  0x40   : > { %470 = vsyncadd (%p692_p9), [#allocation4], 4294967280  ;;  %s161_s8 = sand.u32 1, %s481_s10   ;;  %p693_p1 = scmp.ne.s32.totalorder %s687_s17, 0 }
  0x41   : > { %s325_s15 = sshll.u32 %s161_s8, 3  ;;  %s162_s20 = scalar_lea.sflag [#allocation3], %s161_s8 }
  0x42   : > { %s165_s21 = scalar_lea.vmem [#allocation5], %s325_s15 }
  0x43   : > { %472 = dma.done.wait (%p693_p1), %s162_s20, 128  }
  0x44   : > { %474 = vsyncadd (%p693_p1), %s162_s20, 4294967168 }
  0x45   : > { %170 = sfence }
  0x46   : > { %v196_v0 = vld [vmem:[%s165_s21] sm:$0xff]  ;;  %vm203_vm0 = vcmask 1043456   ;;  %p189_p4 = scmp.lt.s32.totalorder %s489_s12, 1  ;;  %vm215_vm1 = vcmask 3072  }
  0x47   : > { %v197_v1 = vmax.f32 %v196_v0, 1e-06 }
  0x48   : > { %s703_s12 = smov (!%p189_p4, %s489_s12), 1 }
  0x49   : > { %v198_v2 = vmul.f32 %v197_v1, %v197_v1  ;;  %s326_s16 = sshll.u32 %s703_s12, 2 }
  0x4a   : > { %s195_s23 = scalar_lea.vmem %s682_s2, %s326_s16 }
  0x4b   : > { %v199_v3 = vmul.f32 %v198_v2, %v197_v1 }
  0x4d   : > { %v201_v4 = vcombine.high %v199_v3, %v199_v3  ;;  %v204_v5 = vsel %vm203_vm0, %v199_v3, 0.0 }
  0x4f   : > { %v205_v6 = vsel %vm203_vm0, %v201_v4, 0.0 }
  0x50   : > { %v206_v7 = vadd.f32 %v205_v6, %v204_v5 }
  0x52   : > { %207 = vadd.xlane.f32.xlu0 %v206_v7 }
  0xdf   : > { %v208_v8 = vpop.xlane.xlu0 %207 }
  0xe0   : > { %v209_v9 = vmul.f32 0.00390625, %v208_v8 }
  0xe2   : > { %396 = vlog2.f32 %v209_v9 }
  0xec   : > { %v397_v10 = vpop.eup %396 }
  0xed   : > { %v211_v11 = vmul.f32 0.6931472, %v397_v10 }
  0xef   : > { %v212_v12 = vmul.f32 0.33333334, %v211_v11 }
  0xf1   : > { %v213_v13 = vmul.f32 1.442695, %v212_v12 }
  0xf3   : > { %398 = vpow2.f32 %v213_v13 }
  0xfd   : > { %v399_v14 = vpop.eup %398 }
  0xfe   : > { %216 = vst.msk [vmem:[%s195_s23] sm:$0xf] %vm215_vm1, %v399_v14 }
  0xff PF: > { %s16_s14 = sadd.s32 1, %s497_s14   ;;  %s694_s24 = smov %s608_s9 }
 0x100   : > { %p13_p5 = scmp.ge.s32.totalorder %s16_s14, 4   ;;  %s695_s9 = smov %s481_s10 }
 0x101   : > { %s696_s10 = smov %s485_s11  ;;  %s697_s11 = smov %s694_s24 }
 0x102   : > { %s698_s12 = smov %s493_s13  ;;  %s699_s13 = smov %s701_s19 }
 0x103   :  { %15 = sbr.rel (!%p13_p5) target bundleno = 5 (0x5), region = 73 }
 0x10a   :  { %242 = vsyncpa [#allocation3], 1 }
 0x10b   :  { %244 = vsyncpa [#allocation3 + $0x1], 1 }
 0x10c   :  { %245 = vsyncpa [#allocation4], 1 }
 0x10d   :  { %247 = vsyncpa [#allocation4 + $0x1], 1 }

</bundles_post_ra>
